<compile_context>
chip_gen: v7x
topology: tpu7x:2x2x1
jax: 0.10.0
libtpu: 0.0.40
codegen_flags: <defaults>
</compile_context>

<pallas_src>
import functools

import jax
import jax.numpy as jnp
from jax import lax
from jax.experimental import pallas as pl
from jax.experimental.pallas import tpu as pltpu

ALPHA = 0.25
GAMMA = 2.0

_DEFAULT_TILE_ROWS = 1024  # (1024, 100) f32 block = 400 KiB per input buffer


def _focal_partial_kernel(x_ref, y_ref, o_ref, *, alpha, gamma, tile_rows,
                          total_rows, needs_mask):
    x = x_ref[...].astype(jnp.float32)   # logits (native dtype in HBM)
    y = y_ref[...].astype(jnp.float32)   # targets in {0., 1.}

    # Numerically-stable BCE-with-logits: one exp + one log on the EUP.
    e = jnp.exp(-jnp.abs(x))
    bce = jnp.maximum(x, 0.0) - x * y + jnp.log1p(e)

    # pt = exp(-BCE) == sigmoid(x * (2y - 1)) for y in {0,1}.
    # Reuse e = exp(-|x|): sigmoid(|x|) = 1/(1+e), sigmoid(-|x|) = e/(1+e).
    # This removes the second exp per element (EUP is the single-slot unit).
    d = pl.reciprocal(1.0 + e, approx=False)
    z = x * (2.0 * y - 1.0)
    pt = jnp.where(z >= 0.0, d, e * d)

    # at = alpha_table.gather(targets): y==0 -> alpha, y==1 -> 1 - alpha.
    at = jnp.float32(alpha) + jnp.float32(1.0 - 2.0 * alpha) * y

    omp = 1.0 - pt
    g = float(gamma)
    if g == 2.0:                              # module default: (1 - pt)**2
        mod = omp * omp
    elif g == int(g) and g >= 1.0:            # small integer gamma: unrolled muls
        mod = omp
        for _ in range(int(g) - 1):
            mod = mod * omp
    else:
        mod = jnp.power(omp, jnp.float32(g))  # TODO(synk): non-integer gamma path untested on Mosaic

    f = at * mod * bce

    if needs_mask:
        # Ragged last tile: rows past the true batch hold unspecified data.
        row = lax.broadcasted_iota(jnp.int32, f.shape, 0)
        valid = (pl.program_id(0) * tile_rows + row) < total_rows
        f = jnp.where(valid, f, 0.0)

    # (tile_rows, C) -> (tile_rows//8, 8, C), sum over leading axis:
    # sublane-aligned vreg adds on the VPU only — no per-step cross-lane reduce.
    o_ref[0] = f.reshape(tile_rows // 8, 8, f.shape[-1]).sum(axis=0)


def weighted_focal_loss(inputs, targets, *, alpha=ALPHA, gamma=GAMMA,
                        tile_rows=_DEFAULT_TILE_ROWS):
    """inputs, targets: arrays of shape (B, 100). Returns scalar f32 mean focal loss."""
    assert inputs.shape == targets.shape
    assert inputs.ndim == 2 and inputs.shape[-1] == 100, \
        "module semantics require the (-1, 100) layout"
    n_rows, n_cols = inputs.shape

    # Row tile: multiple of 8 sublanes, no larger than the array.
    tr = min(int(tile_rows), n_rows)
    tr = max(8, (tr // 8) * 8)
    num_tiles = pl.cdiv(n_rows, tr)
    needs_mask = (n_rows % tr) != 0

    kernel = functools.partial(
        _focal_partial_kernel,
        alpha=float(alpha), gamma=float(gamma),
        tile_rows=tr, total_rows=n_rows, needs_mask=needs_mask)

    partials = pl.pallas_call(
        kernel,
        out_shape=jax.ShapeDtypeStruct((num_tiles, 8, n_cols), jnp.float32),
        grid_spec=pltpu.PrefetchScalarGridSpec(
            num_scalar_prefetch=0,
            grid=(num_tiles,),
            in_specs=[
                pl.BlockSpec((tr, n_cols), lambda i: (i, 0)),
                pl.BlockSpec((tr, n_cols), lambda i: (i, 0)),
            ],
            out_specs=pl.BlockSpec((1, 8, n_cols), lambda i: (i, 0, 0)),
        ),
        compiler_params=pltpu.CompilerParams(
            dimension_semantics=("parallel",)),   # independent tiles -> megacore-friendly
    )(inputs, targets)

    # Tiny final cross-tile reduce + mean divide in plain JAX (true element count).
    return jnp.sum(partials) / jnp.float32(n_rows * n_cols)


def _reference(inputs, targets, alpha=ALPHA, gamma=GAMMA):
    x = inputs.astype(jnp.float32)
    y = targets.astype(jnp.float32)
    bce = jnp.maximum(x, 0.0) - x * y + jnp.log1p(jnp.exp(-jnp.abs(x)))
    at = jnp.where(y > 0.5, 1.0 - alpha, alpha)
    pt = jnp.exp(-bce)
    return jnp.mean(at * (1.0 - pt) ** gamma * bce)


if __name__ == "__main__":
    key = jax.random.PRNGKey(0)
    k1, k2, k3, k4 = jax.random.split(key, 4)

    # Small aligned batch (single full tile) and a ragged batch that exercises
    # the multi-tile grid + in-kernel tail mask.
    cases = []
    B0 = 8
    cases.append((jax.random.normal(k1, (B0, 100), dtype=jnp.float32) * 4.0,
                  jax.random.bernoulli(k2, p=0.5, shape=(B0, 100)).astype(jnp.float32)))
    B1 = 37
    cases.append((jax.random.normal(k3, (B1, 100), dtype=jnp.float32) * 4.0,
                  jax.random.bernoulli(k4, p=0.5, shape=(B1, 100)).astype(jnp.float32)))

    for x, y in cases:
        loss = jax.block_until_ready(weighted_focal_loss(x, y))
        ref = jax.block_until_ready(_reference(x, y))
        assert jnp.allclose(loss, ref, rtol=1e-5, atol=1e-6), (x.shape, loss, ref)

    print("KERNEL_OK")
</pallas_src>

<mosaic_0001>
module attributes {stable_mosaic.version = 11 : i64} {
  func.func @_focal_partial_kernel(%arg0: i32, %arg1: memref<8x100xf32, #tpu.memory_space<vmem>>, %arg2: memref<8x100xf32, #tpu.memory_space<vmem>>, %arg3: memref<1x8x100xf32, #tpu.memory_space<vmem>>) attributes {dimension_semantics = [#tpu.dimension_semantics<parallel>], iteration_bounds = array<i64: 1>, scalar_prefetch = 0 : i64, scratch_operands = 0 : i64, tpu.core_type = #tpu.core_type<tc>, window_params = [{transform_indices = @transform_0, window_bounds = array<i64: 8, 100>}, {transform_indices = @transform_1, window_bounds = array<i64: 8, 100>}, {transform_indices = @transform_2, window_bounds = array<i64: 1, 8, 100>}]} {
    %c0 = arith.constant 0 : index
    %c0_0 = arith.constant 0 : index
    %0 = vector.load %arg1[%c0, %c0_0] : memref<8x100xf32, #tpu.memory_space<vmem>>, vector<8x100xf32>
    %c0_1 = arith.constant 0 : index
    %c0_2 = arith.constant 0 : index
    %1 = vector.load %arg2[%c0_1, %c0_2] : memref<8x100xf32, #tpu.memory_space<vmem>>, vector<8x100xf32>
    %2 = math.absf %0 : vector<8x100xf32>
    %cst = arith.constant 0.000000e+00 : f32
    %3 = vector.broadcast %cst : f32 to vector<8x100xf32>
    %4 = arith.subf %3, %2 : vector<8x100xf32>
    %5 = math.exp %4 : vector<8x100xf32>
    %cst_3 = arith.constant 0.000000e+00 : f32
    %6 = vector.broadcast %cst_3 : f32 to vector<8x100xf32>
    %7 = arith.maximumf %0, %6 : vector<8x100xf32>
    %8 = arith.mulf %0, %1 : vector<8x100xf32>
    %9 = arith.subf %7, %8 : vector<8x100xf32>
    %10 = math.log1p %5 : vector<8x100xf32>
    %11 = arith.addf %9, %10 : vector<8x100xf32>
    %cst_4 = arith.constant 1.000000e+00 : f32
    %12 = vector.broadcast %cst_4 : f32 to vector<8x100xf32>
    %13 = arith.addf %12, %5 : vector<8x100xf32>
    %14 = tpu.reciprocal %13 : vector<8x100xf32> -> vector<8x100xf32>
    %cst_5 = arith.constant 2.000000e+00 : f32
    %15 = vector.broadcast %cst_5 : f32 to vector<8x100xf32>
    %16 = arith.mulf %15, %1 : vector<8x100xf32>
    %cst_6 = arith.constant 1.000000e+00 : f32
    %17 = vector.broadcast %cst_6 : f32 to vector<8x100xf32>
    %18 = arith.subf %16, %17 : vector<8x100xf32>
    %19 = arith.mulf %0, %18 : vector<8x100xf32>
    %cst_7 = arith.constant 0.000000e+00 : f32
    %20 = vector.broadcast %cst_7 : f32 to vector<8x100xf32>
    %21 = arith.cmpf oge, %19, %20 : vector<8x100xf32>
    %22 = arith.mulf %5, %14 : vector<8x100xf32>
    %23 = arith.select %21, %14, %22 : vector<8x100xi1>, vector<8x100xf32>
    %cst_8 = arith.constant 5.000000e-01 : f32
    %24 = vector.broadcast %cst_8 : f32 to vector<8x100xf32>
    %25 = arith.mulf %24, %1 : vector<8x100xf32>
    %cst_9 = arith.constant 2.500000e-01 : f32
    %26 = vector.broadcast %cst_9 : f32 to vector<8x100xf32>
    %27 = arith.addf %26, %25 : vector<8x100xf32>
    %cst_10 = arith.constant 1.000000e+00 : f32
    %28 = vector.broadcast %cst_10 : f32 to vector<8x100xf32>
    %29 = arith.subf %28, %23 : vector<8x100xf32>
    %30 = arith.mulf %29, %29 : vector<8x100xf32>
    %31 = arith.mulf %27, %30 : vector<8x100xf32>
    %32 = arith.mulf %31, %11 : vector<8x100xf32>
    %33 = vector.shape_cast %32 : vector<8x100xf32> to vector<1x8x100xf32>
    %cst_11 = arith.constant dense<0.000000e+00> : vector<8x100xf32>
    %34 = vector.multi_reduction <add>, %33, %cst_11 [0] : vector<1x8x100xf32> to vector<8x100xf32>
    %c0_12 = arith.constant 0 : index
    %c0_13 = arith.constant 0 : index
    %c0_14 = arith.constant 0 : index
    %35 = vector.load %arg3[%c0_12, %c0_13, %c0_14] : memref<1x8x100xf32, #tpu.memory_space<vmem>>, vector<1x8x100xf32>
    %36 = vector.shape_cast %35 : vector<1x8x100xf32> to vector<8x100xf32>
    %37 = vector.shape_cast %34 : vector<8x100xf32> to vector<1x8x100xf32>
    tpu.vector_store %arg3[%c0_12, %c0_13, %c0_14], %37 {strides = array<i32>} : memref<1x8x100xf32, #tpu.memory_space<vmem>>, vector<1x8x100xf32>,
    return
  }
  func.func @transform_0(%arg0: i32) -> (i32, i32) {
    %c0_i32 = arith.constant 0 : i32
    %c0_i32_0 = arith.constant 0 : i32
    return %arg0, %c0_i32 : i32, i32
  }
  func.func @transform_1(%arg0: i32) -> (i32, i32) {
    %c0_i32 = arith.constant 0 : i32
    %c0_i32_0 = arith.constant 0 : i32
    return %arg0, %c0_i32 : i32, i32
  }
  func.func @transform_2(%arg0: i32) -> (i32, i32, i32) {
    %c0_i32 = arith.constant 0 : i32
    %c0_i32_0 = arith.constant 0 : i32
    %c0_i32_1 = arith.constant 0 : i32
    return %arg0, %c0_i32, %c0_i32_0 : i32, i32, i32
  }
}

</mosaic_0001>

<bundles_post_ra>
// kernel: tpu_custom_call.1
= control target key start
LH: loop header
LB: loop body
LE: loop exit
PB: predicated region body
PF: predicated region fallthrough
CT: control target
= control target key end

     0   :  { %7 = vsyncpa [#allocation3], 0  ;;  %s224_s0 = inlined_call_operand.hbm [shape: f32[8,100], index: 0, kind: input, shape index: {}]   ;;  %s225_s1 = inlined_call_operand.hbm [shape: f32[8,100], index: 1, kind: input, shape index: {}]   ;;  %s226_s2 = inlined_call_operand.hbm [shape: f32[1,8,100], index: 2, kind: output, shape index: {}]  }
   0x1   :  { %8 = vsyncpa [#allocation6], 0 }
   0x2   :  { %9 = vsyncpa [#allocation4], 0  ;;  %s170_s9 = smov [#allocation2]   ;;  %s171_s11 = smov [#allocation5]  }
   0x3   :  { %s16_s10 = sshll.u32 %s170_s9, 4  ;;  %s26_s12 = sshll.u32 %s171_s11, 4  ;;  %s17_s10 = int_to_ptr.vmem [resolvable:$true] %s16_s10  ;;  %s27_s12 = int_to_ptr.vmem [resolvable:$true] %s26_s12 }
   0x4   :  { %s98_s15 = scalar_lea.hbm %s224_s0, 128 }
   0x5   :  { %p99_p0 = scmp.ne.s32.totalorder %s224_s0, %s98_s15  ;;  %p102_p1 = scmp.lt.u32.totalorder %s98_s15, %s224_s0 }
   0x7   :  { %p104_p2 = pnand %p102_p1, %p99_p0 }
   0x9   :  { %107 = shalt.err (!%p104_p2)
}
   0xa   :  { %s108_s20 = scalar_lea.vmem %s17_s10, 128  ;;  %p113_p4 = scmp.lt.s32.totalorder %s17_s10, %s17_s10 }
   0xb   :  { %p109_p3 = scmp.ne.s32.totalorder %s17_s10, %s108_s20  ;;  %p114_p5 = scmp.lt.s32.totalorder %s108_s20, %s108_s20 }
   0xd   :  { %p115_p6 = por %p114_p5, %p113_p4 }
   0xf   :  { %p116_p7 = pnand %p115_p6, %p109_p3 }
  0x11   :  { %119 = shalt.err (!%p116_p7)
}
  0x12   :  { %19 = dma.hbm_to_vmem [thread:$0]  %s224_s0, 128, %s17_s10, [#allocation3]  }
  0x13   :  { %s120_s25 = scalar_lea.hbm %s225_s1, 128 }
  0x14   :  { %p121_p8 = scmp.ne.s32.totalorder %s225_s1, %s120_s25  ;;  %p124_p9 = scmp.lt.u32.totalorder %s120_s25, %s225_s1 }
  0x16   :  { %p126_p10 = pnand %p124_p9, %p121_p8 }
  0x18   :  { %129 = shalt.err (!%p126_p10)
}
  0x19   :  { %s130_s30 = scalar_lea.vmem %s27_s12, 128  ;;  %p135_p12 = scmp.lt.s32.totalorder %s27_s12, %s27_s12 }
  0x1a   :  { %p131_p11 = scmp.ne.s32.totalorder %s27_s12, %s130_s30  ;;  %p136_p13 = scmp.lt.s32.totalorder %s130_s30, %s130_s30 }
  0x1c   :  { %p137_p0 = por %p136_p13, %p135_p12 }
  0x1e   :  { %p138_p1 = pnand %p137_p0, %p131_p11 }
  0x20   :  { %141 = shalt.err (!%p138_p1)
}
  0x21   :  { %29 = dma.hbm_to_vmem [thread:$0]  %s225_s1, 128, %s27_s12, [#allocation6]  }
  0x22   :  { %164 = dma.done.wait [#allocation3], 128  }
  0x23   :  { %165 = vsyncadd [#allocation3], 4294967168 }
  0x24   :  { %166 = dma.done.wait [#allocation6], 128  }
  0x25   :  { %167 = vsyncadd [#allocation6], 4294967168  ;;  %v36_v0 = vld [vmem:[#allocation2] sm:$0xff]  ;;  %v37_v4 = vld [vmem:[#allocation5] sm:$0xff]  ;;  %s172_s1 = smov [#allocation7]   ;;  %vm70_vm2 = vcmask 818176  }
  0x26   :  { %v38_v1 = vand.u32 2147483647, %v36_v0  ;;  %v57_v7 = vmul.f32 2.0, %v37_v4  ;;  %v42_v13 = vmax.f32 %v36_v0, 0.0  ;;  %v43_v14 = vmul.f32 %v37_v4, %v36_v0  ;;  %s78_s4 = sshll.u32 %s172_s1, 4  ;;  %s79_s4 = int_to_ptr.vmem [resolvable:$true] %s78_s4 }
  0x27   :  { %v63_v19 = vmul.f32 0.5, %v37_v4  ;;  %s142_s5 = scalar_lea.vmem %s79_s4, 128  ;;  %p147_p3 = scmp.lt.s32.totalorder %s79_s4, %s79_s4 }
  0x28   :  { %v39_v2 = vsub.f32 0.0, %v38_v1  ;;  %v88_v9 = vadd.f32 -1.0, %v57_v7  ;;  %v44_v21 = vsub.f32 %v42_v13, %v43_v14  ;;  %p143_p2 = scmp.ne.s32.totalorder %s79_s4, %s142_s5  ;;  %p148_p4 = scmp.lt.s32.totalorder %s142_s5, %s142_s5 }
  0x29   :  { %v64_v24 = vadd.f32 0.25, %v63_v19 }
  0x2a   :  { %v40_v3 = vmul.f32 1.442695, %v39_v2  ;;  %v59_v12 = vmul.f32 %v88_v9, %v36_v0  ;;  %p149_p5 = por %p148_p4, %p147_p3 }
  0x2c   :  { %92 = vpow2.f32 %v40_v3  ;;  %vm60_vm1 = vcmp.ge.f32.partialorder %v59_v12, 0.0  ;;  %p150_p6 = pnand %p149_p5, %p143_p2 }
  0x36   :  { %v93_v5 = vpop.eup %92 }
  0x37   :  { %v45_v6 = vadd.f32 1.0, %v93_v5  ;;  %v48_v8 = vmul.f32 -0.5, %v93_v5  ;;  %v51_v11 = vand.u32 2147483647, %v93_v5 }
  0x39   :  { %94 = vlog2.f32 %v45_v6  ;;  %v49_v10 = vadd.f32 1.0, %v48_v8  ;;  %vm52_vm0 = vcmp.lt.f32.partialorder %v51_v11, 0.0004427343 }
  0x3a   :  { %96 = vrcp.f32 %v45_v6 }
  0x3b   :  { %v50_v16 = vmul.f32 %v93_v5, %v49_v10 }
  0x43   :  { %v95_v15 = vpop.eup %94 }
  0x44   :  { %v97_v17 = vpop.eup %96  ;;  %v47_v18 = vmul.f32 0.6931472, %v95_v15 }
  0x45   :  { %v61_v20 = vmul.f32 %v97_v17, %v93_v5 }
  0x46   :  { %v53_v22 = vsel %vm52_vm0, %v50_v16, %v47_v18 }
  0x47   :  { %v62_v23 = vsel %vm60_vm1, %v97_v17, %v61_v20  ;;  %v54_v26 = vadd.f32 %v53_v22, %v44_v21 }
  0x48   :  { %v65_v25 = vsub.f32 1.0, %v62_v23 }
  0x4a   :  { %v66_v27 = vmul.f32 %v65_v25, %v65_v25 }
  0x4c   :  { %v67_v28 = vmul.f32 %v66_v27, %v64_v24 }
  0x4e   :  { %v68_v29 = vmul.f32 %v67_v28, %v54_v26 }
  0x50   :  { %71 = vst.msk [vmem:[#allocation7] sm:$0xff] %vm70_vm2, %v68_v29 }
  0x51   :  { %153 = shalt.err (!%p150_p6)
}
  0x52   :  { %s154_s8 = scalar_lea.hbm %s226_s2, 128 }
  0x53   :  { %p155_p7 = scmp.ne.s32.totalorder %s226_s2, %s154_s8  ;;  %p158_p8 = scmp.lt.u32.totalorder %s154_s8, %s226_s2 }
  0x55   :  { %p160_p9 = pnand %p158_p8, %p155_p7 }
  0x57   :  { %163 = shalt.err (!%p160_p9)
}
  0x58   :  { %81 = dma.vmem_to_hbm [thread:$0]  %s79_s4, 128, %s226_s2, [#allocation4]  }
  0x59   :  { %168 = dma.done.wait [#allocation4], 128  }
  0x5a   :  { %169 = vsyncadd [#allocation4], 4294967168 }
  0x5b   :  { %85 = vsyncpa [#allocation3], 1 }
  0x5c   :  { %86 = vsyncpa [#allocation6], 1 }
  0x5d   :  { %87 = vsyncpa [#allocation4], 1 }

</bundles_post_ra>
